<compile_context>
chip_gen: v7x
topology: tpu7x:2x2x1
jax: 0.10.0
libtpu: 0.0.40
codegen_flags: <defaults>
</compile_context>

<pallas_src>
import jax
import jax.numpy as jnp
from jax.experimental import pallas as pl
from jax.experimental.pallas import tpu as pltpu


def _round_up(x, m):
    return (x + m - 1) // m * m


def _inter_q_kernel(x_ref, hx_ref, cx_ref,
                    w1_ref, b1_ref, wg_ref, bg_ref, w3_ref, b3_ref,
                    q_ref, hy_ref, cy_ref):
    x = x_ref[...]
    hx = hx_ref[...]
    cx = cx_ref[...]
    H = hx.shape[-1]
    Hp = wg_ref.shape[-1] // 4          # 128-aligned per-gate block width
    mm_dtype = w1_ref.dtype             # f32 (default) or bf16 MXU operands

    # ---- inter_q_pre_fc: Linear + ReLU (f32 accumulation) -------------------
    h1 = jnp.dot(x.astype(mm_dtype), w1_ref[...],
                 preferred_element_type=jnp.float32) + b1_ref[...]
    h1 = jnp.maximum(h1, 0.0)

    # ---- fused LSTM gate matmul: one dot over concat([h1, hx]) --------------
    z = jnp.concatenate([h1.astype(mm_dtype), hx.astype(mm_dtype)], axis=-1)
    gates = jnp.dot(z, wg_ref[...],
                    preferred_element_type=jnp.float32) + bg_ref[...]

    # Gate blocks start at 128-lane-aligned offsets 0, Hp, 2Hp, 3Hp.
    # sigmoid(x) == 0.5*tanh(0.5*x) + 0.5  -> single EUP op per gate.
    i_g = 0.5 * jnp.tanh(0.5 * gates[:, 0 * Hp:0 * Hp + H]) + 0.5
    f_g = 0.5 * jnp.tanh(0.5 * gates[:, 1 * Hp:1 * Hp + H]) + 0.5
    g_g = jnp.tanh(gates[:, 2 * Hp:2 * Hp + H])
    o_g = 0.5 * jnp.tanh(0.5 * gates[:, 3 * Hp:3 * Hp + H]) + 0.5

    cy = f_g * cx + i_g * g_g
    hy = o_g * jnp.tanh(cy)

    # ---- inter_q_layer: Linear into a lane-dense (padded-to-128) slab -------
    q = jnp.dot(hy.astype(mm_dtype), w3_ref[...],
                preferred_element_type=jnp.float32) + b3_ref[...]

    q_ref[...] = q
    hy_ref[...] = hy
    cy_ref[...] = cy


def prepare_params(params, matmul_dtype=jnp.float32):
    """One-time packing: transpose, fuse, 128-align. Call once, reuse forever."""
    H = params["w_hh"].shape[1]
    O = params["w3"].shape[0]
    Hp = _round_up(H, 128)
    Op = _round_up(O, 128)

    w1_t = jnp.asarray(params["w1"], jnp.float32).T          # [obs, H]
    b1 = jnp.asarray(params["b1"], jnp.float32)[None, :]     # [1, H]

    # Stack W_ih^T over W_hh^T -> [2H, 4H], then scatter each gate's H columns
    # into its own 128-aligned Hp block -> [2H, 4*Hp]. Same for the pre-added
    # bias (b_ih + b_hh).
    wih_t = jnp.asarray(params["w_ih"], jnp.float32).T       # [H, 4H]
    whh_t = jnp.asarray(params["w_hh"], jnp.float32).T       # [H, 4H]
    w_stack = jnp.concatenate([wih_t, whh_t], axis=0)        # [2H, 4H]
    b_sum = jnp.asarray(params["b_ih"] + params["b_hh"], jnp.float32)

    wg = jnp.zeros((2 * H, 4 * Hp), jnp.float32)
    bg = jnp.zeros((1, 4 * Hp), jnp.float32)
    for k in range(4):
        wg = wg.at[:, k * Hp:k * Hp + H].set(w_stack[:, k * H:(k + 1) * H])
        bg = bg.at[0, k * Hp:k * Hp + H].set(b_sum[k * H:(k + 1) * H])

    # Output head padded to a lane-dense width; extra columns are zero.
    w3p = jnp.zeros((H, Op), jnp.float32).at[:, :O].set(
        jnp.asarray(params["w3"], jnp.float32).T)
    b3p = jnp.zeros((1, Op), jnp.float32).at[0, :O].set(
        jnp.asarray(params["b3"], jnp.float32))

    return {
        "w1": w1_t.astype(matmul_dtype),
        "b1": b1,                                  # biases stay f32 (post-accum add)
        "wg": wg.astype(matmul_dtype),
        "bg": bg,
        "w3": w3p.astype(matmul_dtype),
        "b3": b3p,
        "hidden": H, "hp": Hp, "option_dim": O, "op": Op,
    }


def inter_q_forward(x, hx, cx, prep):
    """x: [B, obs_dim], hx/cx: [B, hidden].  Returns (q, (hy, cy))."""
    B, obs_dim = x.shape
    H, Hp = prep["hidden"], prep["hp"]
    O, Op = prep["option_dim"], prep["op"]

    # Batch grid: whole batch in one block when small, 128-row tiles otherwise
    # (keeps VMEM use bounded on v7x and lets the grid shard across its 2 TCs).
    TB = B if B <= 128 else 128
    grid = (pl.cdiv(B, TB),)

    def act_spec(f):
        return pl.BlockSpec((TB, f), lambda b: (b, 0))

    def resident_spec(arr):
        # Full-array block, constant index map -> stays resident in VMEM.
        return pl.BlockSpec(arr.shape, lambda b: (0,) * arr.ndim)

    w1, b1 = prep["w1"], prep["b1"]
    wg, bg = prep["wg"], prep["bg"]
    w3, b3 = prep["w3"], prep["b3"]

    cost = pl.CostEstimate(
        flops=2 * B * (obs_dim * H + (2 * H) * (4 * Hp) + H * Op),
        transcendentals=5 * B * H,
        bytes_accessed=4 * (x.size + hx.size + cx.size + w1.size + b1.size
                            + wg.size + bg.size + w3.size + b3.size
                            + B * Op + 2 * B * H),
    )

    out_shapes = (
        jax.ShapeDtypeStruct((B, Op), jnp.float32),   # q (padded, lane-dense)
        jax.ShapeDtypeStruct((B, H), jnp.float32),    # hy
        jax.ShapeDtypeStruct((B, H), jnp.float32),    # cy
    )
    # TODO(synk): if the calling RL loop allows in-place state, add
    # input_output_aliases={1: 1, 2: 2} to reuse the hx/cx buffers for hy/cy.
    q_pad, hy, cy = pl.pallas_call(
        _inter_q_kernel,
        out_shape=out_shapes,
        grid=grid,
        in_specs=[act_spec(obs_dim), act_spec(H), act_spec(H),
                  resident_spec(w1), resident_spec(b1),
                  resident_spec(wg), resident_spec(bg),
                  resident_spec(w3), resident_spec(b3)],
        out_specs=(act_spec(Op), act_spec(H), act_spec(H)),
        compiler_params=pltpu.CompilerParams(
            dimension_semantics=("parallel",)),
        cost_estimate=cost,
    )(x, hx, cx, w1, b1, wg, bg, w3, b3)

    return q_pad[:, :O], (hy, cy)


def init_params(key, obs_dim, hidden, option_dim):
    ks = jax.random.split(key, 8)
    u = lambda k, shape, bound: jax.random.uniform(
        k, shape, jnp.float32, minval=-bound, maxval=bound)
    b1_ = 1.0 / jnp.sqrt(obs_dim)
    bh_ = 1.0 / jnp.sqrt(hidden)
    return {
        # inter_q_pre_fc Linear(obs_dim, hidden)
        "w1": u(ks[0], (hidden, obs_dim), b1_),
        "b1": u(ks[1], (hidden,), b1_),
        # LSTM(hidden, hidden): weight_ih_l0 [4H, H], weight_hh_l0 [4H, H]
        "w_ih": u(ks[2], (4 * hidden, hidden), bh_),
        "b_ih": u(ks[3], (4 * hidden,), bh_),
        "w_hh": u(ks[4], (4 * hidden, hidden), bh_),
        "b_hh": u(ks[5], (4 * hidden,), bh_),
        # inter_q_layer Linear(hidden, option_dim)
        "w3": u(ks[6], (option_dim, hidden), bh_),
        "b3": u(ks[7], (option_dim,), bh_),
    }


def _reference(x, hx, cx, p):
    """Pure-JAX reference matching PyTorch semantics."""
    h1 = jax.nn.relu(x @ p["w1"].T + p["b1"])
    gates = h1 @ p["w_ih"].T + p["b_ih"] + hx @ p["w_hh"].T + p["b_hh"]
    H = hx.shape[-1]
    i = jax.nn.sigmoid(gates[:, 0 * H:1 * H])
    f = jax.nn.sigmoid(gates[:, 1 * H:2 * H])
    g = jnp.tanh(gates[:, 2 * H:3 * H])
    o = jax.nn.sigmoid(gates[:, 3 * H:4 * H])
    cy = f * cx + i * g
    hy = o * jnp.tanh(cy)
    q = hy @ p["w3"].T + p["b3"]
    return q, hy, cy


if __name__ == "__main__":
    obs_dim, hidden, option_dim, batch = 16, 32, 4, 8

    key = jax.random.PRNGKey(0)
    kx, kh, kc, kp = jax.random.split(key, 4)
    x = jax.random.normal(kx, (batch, obs_dim), jnp.float32)
    hx = jax.random.normal(kh, (batch, hidden), jnp.float32)
    cx = jax.random.normal(kc, (batch, hidden), jnp.float32)
    params = init_params(kp, obs_dim, hidden, option_dim)

    # One-time weight prep (transpose / fuse / pad) — hoisted out of the
    # per-call path.  Use matmul_dtype=jnp.bfloat16 on v6e/v7x for large sizes.
    prep = prepare_params(params, matmul_dtype=jnp.float32)

    q, (hy, cy) = inter_q_forward(x, hx, cx, prep)
    jax.block_until_ready((q, hy, cy))

    q_ref, hy_ref, cy_ref = _reference(x, hx, cx, params)
    assert jnp.allclose(q, q_ref, atol=1e-5, rtol=1e-5)
    assert jnp.allclose(hy, hy_ref, atol=1e-5, rtol=1e-5)
    assert jnp.allclose(cy, cy_ref, atol=1e-5, rtol=1e-5)

    print("KERNEL_OK")
</pallas_src>

<mosaic_0001>
module attributes {stable_mosaic.version = 11 : i64} {
  func.func @_inter_q_kernel(%arg0: i32, %arg1: memref<8x16xf32, #tpu.memory_space<vmem>>, %arg2: memref<8x32xf32, #tpu.memory_space<vmem>>, %arg3: memref<8x32xf32, #tpu.memory_space<vmem>>, %arg4: memref<16x32xf32, #tpu.memory_space<vmem>>, %arg5: memref<1x32xf32, #tpu.memory_space<vmem>>, %arg6: memref<64x512xf32, #tpu.memory_space<vmem>>, %arg7: memref<1x512xf32, #tpu.memory_space<vmem>>, %arg8: memref<32x128xf32, #tpu.memory_space<vmem>>, %arg9: memref<1x128xf32, #tpu.memory_space<vmem>>, %arg10: memref<8x128xf32, #tpu.memory_space<vmem>>, %arg11: memref<8x32xf32, #tpu.memory_space<vmem>>, %arg12: memref<8x32xf32, #tpu.memory_space<vmem>>) attributes {dimension_semantics = [#tpu.dimension_semantics<parallel>], iteration_bounds = array<i64: 1>, scalar_prefetch = 0 : i64, scratch_operands = 0 : i64, tpu.core_type = #tpu.core_type<tc>, window_params = [{transform_indices = @transform_0, window_bounds = array<i64: 8, 16>}, {transform_indices = @transform_1, window_bounds = array<i64: 8, 32>}, {transform_indices = @transform_2, window_bounds = array<i64: 8, 32>}, {pipeline_mode = #tpu.pipeline_mode<synchronous>, transform_indices = @transform_3, window_bounds = array<i64: 16, 32>}, {pipeline_mode = #tpu.pipeline_mode<synchronous>, transform_indices = @transform_4, window_bounds = array<i64: 1, 32>}, {pipeline_mode = #tpu.pipeline_mode<synchronous>, transform_indices = @transform_5, window_bounds = array<i64: 64, 512>}, {pipeline_mode = #tpu.pipeline_mode<synchronous>, transform_indices = @transform_6, window_bounds = array<i64: 1, 512>}, {pipeline_mode = #tpu.pipeline_mode<synchronous>, transform_indices = @transform_7, window_bounds = array<i64: 32, 128>}, {pipeline_mode = #tpu.pipeline_mode<synchronous>, transform_indices = @transform_8, window_bounds = array<i64: 1, 128>}, {transform_indices = @transform_9, window_bounds = array<i64: 8, 128>}, {transform_indices = @transform_10, window_bounds = array<i64: 8, 32>}, {transform_indices = @transform_11, window_bounds = array<i64: 8, 32>}]} {
    %c0 = arith.constant 0 : index
    %c0_0 = arith.constant 0 : index
    %0 = vector.load %arg1[%c0, %c0_0] : memref<8x16xf32, #tpu.memory_space<vmem>>, vector<8x16xf32>
    %c0_1 = arith.constant 0 : index
    %c0_2 = arith.constant 0 : index
    %1 = vector.load %arg2[%c0_1, %c0_2] : memref<8x32xf32, #tpu.memory_space<vmem>>, vector<8x32xf32>
    %c0_3 = arith.constant 0 : index
    %c0_4 = arith.constant 0 : index
    %2 = vector.load %arg3[%c0_3, %c0_4] : memref<8x32xf32, #tpu.memory_space<vmem>>, vector<8x32xf32>
    %c0_5 = arith.constant 0 : index
    %c0_6 = arith.constant 0 : index
    %3 = vector.load %arg4[%c0_5, %c0_6] : memref<16x32xf32, #tpu.memory_space<vmem>>, vector<16x32xf32>
    %cst = arith.constant dense<0.000000e+00> : vector<8x32xf32>
    %4 = tpu.matmul %0, %3, %cst {dimension_numbers = #tpu.dot_dimension_numbers<[1], [0], [0], [1], [0, 0, 1, 1], [], []>} : vector<8x16xf32>, vector<16x32xf32>, vector<8x32xf32> -> vector<8x32xf32>
    %c0_7 = arith.constant 0 : index
    %c0_8 = arith.constant 0 : index
    %5 = vector.load %arg5[%c0_7, %c0_8] : memref<1x32xf32, #tpu.memory_space<vmem>>, vector<1x32xf32>
    %6 = vector.broadcast %5 : vector<1x32xf32> to vector<8x32xf32>
    %7 = arith.addf %4, %6 : vector<8x32xf32>
    %cst_9 = arith.constant 0.000000e+00 : f32
    %8 = vector.broadcast %cst_9 : f32 to vector<8x32xf32>
    %9 = arith.maximumf %7, %8 : vector<8x32xf32>
    %10 = tpu.concatenate %9, %1 in 1 : vector<8x32xf32>, vector<8x32xf32> -> vector<8x64xf32>
    %c0_10 = arith.constant 0 : index
    %c0_11 = arith.constant 0 : index
    %11 = vector.load %arg6[%c0_10, %c0_11] : memref<64x512xf32, #tpu.memory_space<vmem>>, vector<64x512xf32>
    %cst_12 = arith.constant dense<0.000000e+00> : vector<8x512xf32>
    %12 = tpu.matmul %10, %11, %cst_12 {dimension_numbers = #tpu.dot_dimension_numbers<[1], [0], [0], [1], [0, 0, 1, 1], [], []>} : vector<8x64xf32>, vector<64x512xf32>, vector<8x512xf32> -> vector<8x512xf32>
    %c0_13 = arith.constant 0 : index
    %c0_14 = arith.constant 0 : index
    %13 = vector.load %arg7[%c0_13, %c0_14] : memref<1x512xf32, #tpu.memory_space<vmem>>, vector<1x512xf32>
    %14 = vector.broadcast %13 : vector<1x512xf32> to vector<8x512xf32>
    %15 = arith.addf %12, %14 : vector<8x512xf32>
    %16 = vector.extract_strided_slice %15 {offsets = [0, 0], sizes = [8, 32], strides = [1, 1]} : vector<8x512xf32> to vector<8x32xf32>
    %cst_15 = arith.constant 5.000000e-01 : f32
    %17 = vector.broadcast %cst_15 : f32 to vector<8x32xf32>
    %18 = arith.mulf %17, %16 : vector<8x32xf32>
    %19 = math.tanh %18 : vector<8x32xf32>
    %cst_16 = arith.constant 5.000000e-01 : f32
    %20 = vector.broadcast %cst_16 : f32 to vector<8x32xf32>
    %21 = arith.mulf %20, %19 : vector<8x32xf32>
    %cst_17 = arith.constant 5.000000e-01 : f32
    %22 = vector.broadcast %cst_17 : f32 to vector<8x32xf32>
    %23 = arith.addf %21, %22 : vector<8x32xf32>
    %24 = vector.extract_strided_slice %15 {offsets = [0, 128], sizes = [8, 32], strides = [1, 1]} : vector<8x512xf32> to vector<8x32xf32>
    %cst_18 = arith.constant 5.000000e-01 : f32
    %25 = vector.broadcast %cst_18 : f32 to vector<8x32xf32>
    %26 = arith.mulf %25, %24 : vector<8x32xf32>
    %27 = math.tanh %26 : vector<8x32xf32>
    %cst_19 = arith.constant 5.000000e-01 : f32
    %28 = vector.broadcast %cst_19 : f32 to vector<8x32xf32>
    %29 = arith.mulf %28, %27 : vector<8x32xf32>
    %cst_20 = arith.constant 5.000000e-01 : f32
    %30 = vector.broadcast %cst_20 : f32 to vector<8x32xf32>
    %31 = arith.addf %29, %30 : vector<8x32xf32>
    %32 = vector.extract_strided_slice %15 {offsets = [0, 256], sizes = [8, 32], strides = [1, 1]} : vector<8x512xf32> to vector<8x32xf32>
    %33 = math.tanh %32 : vector<8x32xf32>
    %34 = vector.extract_strided_slice %15 {offsets = [0, 384], sizes = [8, 32], strides = [1, 1]} : vector<8x512xf32> to vector<8x32xf32>
    %cst_21 = arith.constant 5.000000e-01 : f32
    %35 = vector.broadcast %cst_21 : f32 to vector<8x32xf32>
    %36 = arith.mulf %35, %34 : vector<8x32xf32>
    %37 = math.tanh %36 : vector<8x32xf32>
    %cst_22 = arith.constant 5.000000e-01 : f32
    %38 = vector.broadcast %cst_22 : f32 to vector<8x32xf32>
    %39 = arith.mulf %38, %37 : vector<8x32xf32>
    %cst_23 = arith.constant 5.000000e-01 : f32
    %40 = vector.broadcast %cst_23 : f32 to vector<8x32xf32>
    %41 = arith.addf %39, %40 : vector<8x32xf32>
    %42 = arith.mulf %31, %2 : vector<8x32xf32>
    %43 = arith.mulf %23, %33 : vector<8x32xf32>
    %44 = arith.addf %42, %43 : vector<8x32xf32>
    %45 = math.tanh %44 : vector<8x32xf32>
    %46 = arith.mulf %41, %45 : vector<8x32xf32>
    %c0_24 = arith.constant 0 : index
    %c0_25 = arith.constant 0 : index
    %47 = vector.load %arg8[%c0_24, %c0_25] : memref<32x128xf32, #tpu.memory_space<vmem>>, vector<32x128xf32>
    %cst_26 = arith.constant dense<0.000000e+00> : vector<8x128xf32>
    %48 = tpu.matmul %46, %47, %cst_26 {dimension_numbers = #tpu.dot_dimension_numbers<[1], [0], [0], [1], [0, 0, 1, 1], [], []>} : vector<8x32xf32>, vector<32x128xf32>, vector<8x128xf32> -> vector<8x128xf32>
    %c0_27 = arith.constant 0 : index
    %c0_28 = arith.constant 0 : index
    %49 = vector.load %arg9[%c0_27, %c0_28] : memref<1x128xf32, #tpu.memory_space<vmem>>, vector<1x128xf32>
    %50 = vector.broadcast %49 : vector<1x128xf32> to vector<8x128xf32>
    %51 = arith.addf %48, %50 : vector<8x128xf32>
    %c0_29 = arith.constant 0 : index
    %c0_30 = arith.constant 0 : index
    %52 = vector.load %arg10[%c0_29, %c0_30] : memref<8x128xf32, #tpu.memory_space<vmem>>, vector<8x128xf32>
    tpu.vector_store %arg10[%c0_29, %c0_30], %51 {strides = array<i32>} : memref<8x128xf32, #tpu.memory_space<vmem>>, vector<8x128xf32>,
    %c0_31 = arith.constant 0 : index
    %c0_32 = arith.constant 0 : index
    %53 = vector.load %arg11[%c0_31, %c0_32] : memref<8x32xf32, #tpu.memory_space<vmem>>, vector<8x32xf32>
    tpu.vector_store %arg11[%c0_31, %c0_32], %46 {strides = array<i32>} : memref<8x32xf32, #tpu.memory_space<vmem>>, vector<8x32xf32>,
    %c0_33 = arith.constant 0 : index
    %c0_34 = arith.constant 0 : index
    %54 = vector.load %arg12[%c0_33, %c0_34] : memref<8x32xf32, #tpu.memory_space<vmem>>, vector<8x32xf32>
    tpu.vector_store %arg12[%c0_33, %c0_34], %44 {strides = array<i32>} : memref<8x32xf32, #tpu.memory_space<vmem>>, vector<8x32xf32>,
    return
  }
  func.func @transform_0(%arg0: i32) -> (i32, i32) {
    %c0_i32 = arith.constant 0 : i32
    %c0_i32_0 = arith.constant 0 : i32
    return %arg0, %c0_i32 : i32, i32
  }
  func.func @transform_1(%arg0: i32) -> (i32, i32) {
    %c0_i32 = arith.constant 0 : i32
    %c0_i32_0 = arith.constant 0 : i32
    return %arg0, %c0_i32 : i32, i32
  }
  func.func @transform_2(%arg0: i32) -> (i32, i32) {
    %c0_i32 = arith.constant 0 : i32
    %c0_i32_0 = arith.constant 0 : i32
    return %arg0, %c0_i32 : i32, i32
  }
  func.func @transform_3(%arg0: i32) -> (i32, i32) {
    %c0_i32 = arith.constant 0 : i32
    %c0_i32_0 = arith.constant 0 : i32
    %c0_i32_1 = arith.constant 0 : i32
    return %c0_i32, %c0_i32_0 : i32, i32
  }
  func.func @transform_4(%arg0: i32) -> (i32, i32) {
    %c0_i32 = arith.constant 0 : i32
    %c0_i32_0 = arith.constant 0 : i32
    %c0_i32_1 = arith.constant 0 : i32
    return %c0_i32, %c0_i32_0 : i32, i32
  }
  func.func @transform_5(%arg0: i32) -> (i32, i32) {
    %c0_i32 = arith.constant 0 : i32
    %c0_i32_0 = arith.constant 0 : i32
    %c0_i32_1 = arith.constant 0 : i32
    return %c0_i32, %c0_i32_0 : i32, i32
  }
  func.func @transform_6(%arg0: i32) -> (i32, i32) {
    %c0_i32 = arith.constant 0 : i32
    %c0_i32_0 = arith.constant 0 : i32
    %c0_i32_1 = arith.constant 0 : i32
    return %c0_i32, %c0_i32_0 : i32, i32
  }
  func.func @transform_7(%arg0: i32) -> (i32, i32) {
    %c0_i32 = arith.constant 0 : i32
    %c0_i32_0 = arith.constant 0 : i32
    %c0_i32_1 = arith.constant 0 : i32
    return %c0_i32, %c0_i32_0 : i32, i32
  }
  func.func @transform_8(%arg0: i32) -> (i32, i32) {
    %c0_i32 = arith.constant 0 : i32
    %c0_i32_0 = arith.constant 0 : i32
    %c0_i32_1 = arith.constant 0 : i32
    return %c0_i32, %c0_i32_0 : i32, i32
  }
  func.func @transform_9(%arg0: i32) -> (i32, i32) {
    %c0_i32 = arith.constant 0 : i32
    %c0_i32_0 = arith.constant 0 : i32
    return %arg0, %c0_i32 : i32, i32
  }
  func.func @transform_10(%arg0: i32) -> (i32, i32) {
    %c0_i32 = arith.constant 0 : i32
    %c0_i32_0 = arith.constant 0 : i32
    return %arg0, %c0_i32 : i32, i32
  }
  func.func @transform_11(%arg0: i32) -> (i32, i32) {
    %c0_i32 = arith.constant 0 : i32
    %c0_i32_0 = arith.constant 0 : i32
    return %arg0, %c0_i32 : i32, i32
  }
}

</mosaic_0001>

<bundles_post_ra>
// kernel: tpu_custom_call.1
= control target key start
LH: loop header
LB: loop body
LE: loop exit
PB: predicated region body
PF: predicated region fallthrough
CT: control target
= control target key end

     0   :  { %17 = vsyncpa [#allocation3], 0  ;;  %s1087_s0 = inlined_call_operand.hbm [shape: f32[8,16], index: 0, kind: input, shape index: {}]   ;;  %s1088_s1 = inlined_call_operand.hbm [shape: f32[8,32], index: 1, kind: input, shape index: {}]   ;;  %s1089_s2 = inlined_call_operand.hbm [shape: f32[8,32], index: 2, kind: input, shape index: {}]   ;;  %s1090_s3 = inlined_call_operand.hbm [shape: f32[16,32], index: 3, kind: input, shape index: {}]   ;;  %s1091_s4 = inlined_call_operand.vmem [shape: f32[1,32], index: 4, kind: input, shape index: {}]   ;;  %s1092_s5 = inlined_call_operand.hbm [shape: f32[64,512], index: 5, kind: input, shape index: {}]   ;;  %s1093_s6 = inlined_call_operand.vmem [shape: f32[1,512], index: 6, kind: input, shape index: {}]   ;;  %s1094_s7 = inlined_call_operand.hbm [shape: f32[32,128], index: 7, kind: input, shape index: {}]   ;;  %s1095_s8 = inlined_call_operand.vmem [shape: f32[1,128], index: 8, kind: input, shape index: {}]   ;;  %s1096_s9 = inlined_call_operand.hbm [shape: f32[8,128], index: 9, kind: output, shape index: {0}]   ;;  %s1097_s10 = inlined_call_operand.hbm [shape: f32[8,32], index: 10, kind: output, shape index: {1}]   ;;  %s1098_s11 = inlined_call_operand.hbm [shape: f32[8,32], index: 11, kind: output, shape index: {2}]  }
   0x1   :  { %18 = vsyncpa [#allocation6], 0 }
   0x2   :  { %19 = vsyncpa [#allocation9], 0 }
   0x3   :  { %20 = vsyncpa [#allocation12], 0 }
   0x4   :  { %21 = vsyncpa [#allocation4], 0 }
   0x5   :  { %22 = vsyncpa [#allocation15], 0  ;;  %s865_s17 = smov [#allocation5]   ;;  %s866_s19 = smov [#allocation8]  }
   0x6   :  { %s39_s18 = sshll.u32 %s865_s17, 4  ;;  %s58_s20 = sshll.u32 %s866_s19, 4  ;;  %s40_s18 = int_to_ptr.vmem [resolvable:$true] %s39_s18  ;;  %s941_s20 = int_to_ptr.vmem [resolvable:$true] %s58_s20 }
   0x7   :  { %s655_s23 = scalar_lea.hbm %s1088_s1, 128 }
   0x8   :  { %p656_p0 = scmp.ne.s32.totalorder %s1088_s1, %s655_s23  ;;  %p659_p1 = scmp.lt.u32.totalorder %s655_s23, %s1088_s1 }
   0xa   :  { %p661_p2 = pnand %p659_p1, %p656_p0 }
   0xc   :  { %664 = shalt.err (!%p661_p2)
}
   0xd   :  { %s665_s28 = scalar_lea.vmem %s40_s18, 128  ;;  %p670_p4 = scmp.lt.s32.totalorder %s40_s18, %s40_s18 }
   0xe   :  { %p666_p3 = scmp.ne.s32.totalorder %s40_s18, %s665_s28  ;;  %p671_p5 = scmp.lt.s32.totalorder %s665_s28, %s665_s28 }
  0x10   :  { %p672_p6 = por %p671_p5, %p670_p4 }
  0x12   :  { %p673_p7 = pnand %p672_p6, %p666_p3 }
  0x14   :  { %676 = shalt.err (!%p673_p7)
}
  0x15   :  { %42 = dma.hbm_to_vmem [thread:$0]  %s1088_s1, 128, %s40_s18, [#allocation6]  }
  0x16   :  { %s677_s14 = scalar_lea.hbm %s1090_s3, 256 }
  0x17   :  { %p678_p8 = scmp.ne.s32.totalorder %s1090_s3, %s677_s14  ;;  %p681_p9 = scmp.lt.u32.totalorder %s677_s14, %s1090_s3 }
  0x19   :  { %p683_p10 = pnand %p681_p9, %p678_p8 }
  0x1b   :  { %686 = shalt.err (!%p683_p10)
}
  0x1c   :  { %s687_s21 = scalar_lea.vmem %s941_s20, 256  ;;  %p692_p12 = scmp.lt.s32.totalorder %s941_s20, %s941_s20 }
  0x1d   :  { %p688_p11 = scmp.ne.s32.totalorder %s941_s20, %s687_s21  ;;  %p693_p13 = scmp.lt.s32.totalorder %s687_s21, %s687_s21 }
  0x1f   :  { %p694_p0 = por %p693_p13, %p692_p12 }
  0x21   :  { %p695_p1 = pnand %p694_p0, %p688_p11 }
  0x23   :  { %698 = shalt.err (!%p695_p1)
}
  0x24   :  { %s867_s1 = smov 128   ;;  %s868_s18 = smov 8  }
  0x25   :  { %64 = dma.hbm_to_vmem [thread:$0]  %s1090_s3, 256, %s941_s20, [#allocation9], %s867_s1, %s867_s1, %s868_s18  }
  0x26   :  { %s869_s24 = smov [#allocation2]   ;;  %s870_s26 = smov [#allocation7]  }
  0x27   :  { %s29_s25 = sshll.u32 %s869_s24, 4  ;;  %s49_s27 = sshll.u32 %s870_s26, 4  ;;  %s30_s25 = int_to_ptr.vmem [resolvable:$true] %s29_s25  ;;  %s50_s27 = int_to_ptr.vmem [resolvable:$true] %s49_s27 }
  0x28   :  { %s699_s30 = scalar_lea.hbm %s1087_s0, 128 }
  0x29   :  { %p700_p2 = scmp.ne.s32.totalorder %s1087_s0, %s699_s30  ;;  %p703_p3 = scmp.lt.u32.totalorder %s699_s30, %s1087_s0 }
  0x2b   :  { %p705_p4 = pnand %p703_p3, %p700_p2 }
  0x2d   :  { %708 = shalt.err (!%p705_p4)
}
  0x2e   :  { %s709_s3 = scalar_lea.vmem %s30_s25, 128  ;;  %p714_p6 = scmp.lt.s32.totalorder %s30_s25, %s30_s25 }
  0x2f   :  { %p710_p5 = scmp.ne.s32.totalorder %s30_s25, %s709_s3  ;;  %p715_p7 = scmp.lt.s32.totalorder %s709_s3, %s709_s3 }
  0x31   :  { %p716_p8 = por %p715_p7, %p714_p6 }
  0x33   :  { %p717_p9 = pnand %p716_p8, %p710_p5 }
  0x35   :  { %720 = shalt.err (!%p717_p9)
}
  0x36   :  { %32 = dma.hbm_to_vmem [thread:$0]  %s1087_s0, 128, %s30_s25, [#allocation3]  }
  0x37   :  { %s721_s21 = scalar_lea.hbm %s1089_s2, 128 }
  0x38   :  { %p722_p10 = scmp.ne.s32.totalorder %s1089_s2, %s721_s21  ;;  %p725_p11 = scmp.lt.u32.totalorder %s721_s21, %s1089_s2 }
  0x3a   :  { %p727_p12 = pnand %p725_p11, %p722_p10 }
  0x3c   :  { %730 = shalt.err (!%p727_p12)
}
  0x3d   :  { %s731_s28 = scalar_lea.vmem %s50_s27, 128  ;;  %p736_p0 = scmp.lt.s32.totalorder %s50_s27, %s50_s27 }
  0x3e   :  { %p732_p13 = scmp.ne.s32.totalorder %s50_s27, %s731_s28  ;;  %p737_p1 = scmp.lt.s32.totalorder %s731_s28, %s731_s28 }
  0x40   :  { %p738_p2 = por %p737_p1, %p736_p0 }
  0x42   :  { %p739_p3 = pnand %p738_p2, %p732_p13 }
  0x44   :  { %742 = shalt.err (!%p739_p3)
}
  0x45   :  { %52 = dma.hbm_to_vmem [thread:$0]  %s1089_s2, 128, %s50_s27, [#allocation6]  }
  0x46   :  { %s871_s29 = smov [#allocation10]   ;;  %s743_s14 = scalar_lea.hbm %s1092_s5, 4096 }
  0x47   :  { %s72_s30 = sshll.u32 %s871_s29, 4  ;;  %p744_p4 = scmp.ne.s32.totalorder %s1092_s5, %s743_s14  ;;  %s73_s30 = int_to_ptr.vmem [resolvable:$true] %s72_s30 }
  0x48   :  { %p747_p5 = scmp.lt.u32.totalorder %s743_s14, %s1092_s5 }
  0x4a   :  { %p749_p6 = pnand %p747_p5, %p744_p4 }
  0x4c   :  { %752 = shalt.err (!%p749_p6)
}
  0x4d   :  { %s753_s17 = scalar_lea.vmem %s73_s30, 4096  ;;  %p758_p8 = scmp.lt.s32.totalorder %s73_s30, %s73_s30 }
  0x4e   :  { %p754_p7 = scmp.ne.s32.totalorder %s73_s30, %s753_s17  ;;  %p759_p9 = scmp.lt.s32.totalorder %s753_s17, %s753_s17 }
  0x50   :  { %p760_p10 = por %p759_p9, %p758_p8 }
  0x52   :  { %p761_p11 = pnand %p760_p10, %p754_p7 }
  0x54   :  { %764 = shalt.err (!%p761_p11)
}
  0x55   :  { %s872_s2 = smov 512   ;;  %s873_s27 = smov 32  }
  0x56   :  { %78 = dma.hbm_to_vmem [thread:$0]  %s1092_s5, 4096, %s73_s30, [#allocation9], %s872_s2, %s872_s2, %s873_s27  }
  0x57   :  { %s874_s22 = smov [#allocation11]   ;;  %s765_s28 = scalar_lea.hbm %s1094_s7, 512 }
  0x58   :  { %s86_s23 = sshll.u32 %s874_s22, 4  ;;  %p766_p12 = scmp.ne.s32.totalorder %s1094_s7, %s765_s28  ;;  %s87_s23 = int_to_ptr.vmem [resolvable:$true] %s86_s23 }
  0x59   :  { %p769_p13 = scmp.lt.u32.totalorder %s765_s28, %s1094_s7 }
  0x5b   :  { %p771_p0 = pnand %p769_p13, %p766_p12 }
  0x5d   :  { %774 = shalt.err (!%p771_p0)
}
  0x5e   :  { %s775_s13 = scalar_lea.vmem %s87_s23, 512  ;;  %p780_p2 = scmp.lt.s32.totalorder %s87_s23, %s87_s23 }
  0x5f   :  { %p776_p1 = scmp.ne.s32.totalorder %s87_s23, %s775_s13  ;;  %p781_p3 = scmp.lt.s32.totalorder %s775_s13, %s775_s13 }
  0x61   :  { %p782_p4 = por %p781_p3, %p780_p2 }
  0x63   :  { %p783_p5 = pnand %p782_p4, %p776_p1 }
  0x65   :  { %786 = shalt.err (!%p783_p5)
}
  0x66   :  { %92 = dma.hbm_to_vmem [thread:$0]  %s1094_s7, 512, %s87_s23, [#allocation12], %s867_s1, %s867_s1, %s868_s18  }
  0x67   :  { %853 = dma.done.wait [#allocation3], 128  }
  0x68   :  { %854 = vsyncadd [#allocation3], 4294967168 }
  0x69   :  { %855 = dma.done.wait [#allocation6], 256  }
  0x6a   :  { %856 = vsyncadd [#allocation6], 4294967040 }
  0x6b   :  { %857 = dma.done.wait [#allocation9], 4352  }
  0x6c   :  { %858 = vsyncadd [#allocation9], 4294962944 }
  0x6d   :  { %859 = dma.done.wait [#allocation12], 512  }
  0x6e   :  { %860 = vsyncadd [#allocation12], 4294966784  ;;  %v875_v0 = vmov 0.0|0.0   ;;  %vm876_vm0 = vmmov 0   ;;  %v877_v1 = vmov 0.0   ;;  %v116_v2 = vld [vmem:[#allocation8] sm:$0xff] }
  0x6f   :  { %588 = vmatprep.subr.bf16.mxu0 %v875_v0  ;;  %574 = vmatprep.mubr.msk.f32.mxu0 %vm876_vm0, %v877_v1  ;;  %v117_v3 = vld [vmem:[#allocation8 + $0x8] sm:$0xff]  ;;  %v114_v6 = vld [vmem:[#allocation5] sm:$0xff]  ;;  %v207_v7 = vld [vmem:[#allocation10 + $0x8] sm:$0xff]  ;;  %vm125_vm1 = vcmask 130048   ;;  %vm204_vm2 = vcmask 261120   ;;  %vm260_vm3 = vcmask 523264  }
  0x70   :  { %328 = vmatprep.mubr.f32.mxu1 %v877_v1  ;;  %v589_v4 = vpack.c.bf16 %v117_v3, %v116_v2  ;;  %v113_v5 = vld [vmem:[#allocation2] sm:$0xff]  ;;  %v211_v8 = vld [vmem:[#allocation10 + $0x28] sm:$0xff]  ;;  %201 = vrot.lane.b32.xlu0 %v114_v6, %s873_s27  ;;  %v206_v12 = vld [vmem:[#allocation10] sm:$0xff]  ;;  %v240_v6 = vlaneseq }
  0x71   :  { %v591_v9 = vpack.c.bf16 %v211_v8, %v207_v7  ;;  %v209_v10 = vld [vmem:[#allocation10 + $0x18] sm:$0xff]  ;;  %v210_v14 = vld [vmem:[#allocation10 + $0x20] sm:$0xff]  ;;  %v208_v15 = vld [vmem:[#allocation10 + $0x10] sm:$0xff] }
  0x72   :  { %v213_v11 = vld [vmem:[#allocation10 + $0x38] sm:$0xff]  ;;  %590 = vmatpush3.bf16.msra.mxu0 %v589_v4  ;;  %v212_v16 = vld [vmem:[#allocation10 + $0x30] sm:$0xff]  ;;  %v593_v17 = vpack.c.bf16 %v210_v14, %v206_v12  ;;  %v215_v19 = vld [vmem:[#allocation10 + $0x48] sm:$0xff]  ;;  %v241_v7 = vshrl.u32 %v240_v6, 7 }
  0x73   :  { %v607_v13 = vpack.c.bf16 %v213_v11, %v209_v10  ;;  %592 = vmatprep.subr.bf16.mxu1 %v591_v9  ;;  %v609_v18 = vpack.c.bf16 %v212_v16, %v208_v15  ;;  %v219_v20 = vld [vmem:[#allocation10 + $0x68] sm:$0xff]  ;;  %v217_v21 = vld [vmem:[#allocation10 + $0x58] sm:$0xff]  ;;  %v214_v24 = vld [vmem:[#allocation10 + $0x40] sm:$0xff] }
  0x74   :  { %v595_v22 = vpack.c.bf16 %v219_v20, %v215_v19  ;;  %v221_v23 = vld [vmem:[#allocation10 + $0x78] sm:$0xff]  ;;  %v218_v25 = vld [vmem:[#allocation10 + $0x60] sm:$0xff]  ;;  %594 = vmatpush1.bf16.msra.mxu1 %v593_v17  ;;  %v216_v28 = vld [vmem:[#allocation10 + $0x50] sm:$0xff]  ;;  %v242_v8 = vsub.s32 0, %v241_v7  ;;  %v246_v10 = vsub.s32 1, %v241_v7  ;;  %v254_v17 = vsub.s32 3, %v241_v7 }
  0x75   :  { %608 = vmatprep.subr.bf16.mxu0 %v607_v13  ;;  %575 = vmatmul.mubr.msk.f32.vlgmr.msra.gmra.mrb[0].mxu0 %vm125_vm1, %v113_v5  ;;  %v611_v26 = vpack.c.bf16 %v221_v23, %v217_v21  ;;  %v597_v27 = vpack.c.bf16 %v218_v25, %v214_v24  ;;  %v220_v29 = vld [vmem:[#allocation10 + $0x70] sm:$0xff]  ;;  %v223_v30 = vld [vmem:[#allocation10 + $0x88] sm:$0xff]  ;;  %v225_v33 = vld [vmem:[#allocation10 + $0x98] sm:$0xff] }
  0x76   :  { %610 = vmatpush1.bf16.msra.mxu0 %v609_v18  ;;  %596 = vmatprep.subr.bf16.mxu1 %v595_v22  ;;  %v613_v31 = vpack.c.bf16 %v220_v29, %v216_v28  ;;  %v227_v32 = vld [vmem:[#allocation10 + $0xa8] sm:$0xff]  ;;  %v229_v34 = vld [vmem:[#allocation10 + $0xb8] sm:$0xff]  ;;  %v222_v37 = vld [vmem:[#allocation10 + $0x80] sm:$0xff] }
  0x77   :  { %612 = vmatprep.subr.bf16.mxu0 %v611_v26  ;;  %v599_v35 = vpack.c.bf16 %v227_v32, %v223_v30  ;;  %v615_v36 = vpack.c.bf16 %v229_v34, %v225_v33  ;;  %v226_v38 = vld [vmem:[#allocation10 + $0xa0] sm:$0xff]  ;;  %v224_v39 = vld [vmem:[#allocation10 + $0x90] sm:$0xff]  ;;  %399 = vmatprep.mubr.f32.mxu0 %v877_v1  ;;  %v231_v43 = vld [vmem:[#allocation10 + $0xc8] sm:$0xff] }
  0x78   :  { %v228_v40 = vld [vmem:[#allocation10 + $0xb0] sm:$0xff]  ;;  %598 = vmatpush1.bf16.msra.mxu1 %v597_v27  ;;  %v601_v41 = vpack.c.bf16 %v226_v38, %v222_v37  ;;  %v235_v44 = vld [vmem:[#allocation10 + $0xe8] sm:$0xff]  ;;  %v233_v45 = vld [vmem:[#allocation10 + $0xd8] sm:$0xff] }
  0x79   :  { %600 = vmatprep.subr.bf16.mxu1 %v599_v35  ;;  %v617_v42 = vpack.c.bf16 %v228_v40, %v224_v39  ;;  %v603_v46 = vpack.c.bf16 %v235_v44, %v231_v43  ;;  %v237_v47 = vld [vmem:[#allocation10 + $0xf8] sm:$0xff]  ;;  %v230_v48 = vld [vmem:[#allocation10 + $0xc0] sm:$0xff]  ;;  %v232_v52 = vld [vmem:[#allocation10 + $0xd0] sm:$0xff] }
  0x7a   :  { %614 = vmatpush1.bf16.msra.mxu0 %v613_v31  ;;  %v234_v49 = vld [vmem:[#allocation10 + $0xe0] sm:$0xff]  ;;  %v619_v50 = vpack.c.bf16 %v237_v47, %v233_v45  ;;  %v236_v53 = vld [vmem:[#allocation10 + $0xf0] sm:$0xff]  ;;  %v556_v55 = vld [vmem:[%s1091_s4] ss:$0 sm:$0xff] }
  0x7b   :  { %616 = vmatprep.subr.bf16.mxu0 %v615_v36  ;;  %v605_v51 = vpack.c.bf16 %v234_v49, %v230_v48  ;;  %v621_v54 = vpack.c.bf16 %v236_v53, %v232_v52  ;;  %v424_v62 = vld [vmem:[#allocation11] sm:$0xff]  ;;  %v425_v63 = vld [vmem:[#allocation11 + $0x8] sm:$0xff]  ;;  %v426_v3 = vld [vmem:[#allocation11 + $0x10] sm:$0xff] }
  0x7c   :  { %602 = vmatpush1.bf16.msra.mxu1 %v601_v41  ;;  %v624_v2 = vpack.c.bf16 %v425_v63, %v424_v62  ;;  %v427_v4 = vld [vmem:[#allocation11 + $0x18] sm:$0xff]  ;;  %v115_v31 = vld [vmem:[#allocation7] sm:$0xff] }
  0x7d   :  { %604 = vmatprep.subr.bf16.mxu1 %v603_v46  ;;  %v627_v5 = vpack.c.bf16 %v427_v4, %v426_v3  ;;  %v238_v9 = vld [vmem:[%s1093_s6] sm:$0xf]  ;;  %s878_s6 = smov [#allocation14]  }
  0x7e   :  { %618 = vmatpush1.bf16.msra.mxu0 %v617_v42  ;;  %v243_v11 = vrot.slane %v238_v9, %v242_v8  ;;  %v247_v12 = vrot.slane %v238_v9, %v246_v10  ;;  %v255_v23 = vrot.slane %v238_v9, %v254_v17  ;;  %s527_s14 = sshll.u32 %s878_s6, 4  ;;  %s528_s14 = int_to_ptr.vmem [resolvable:$true] %s527_s14 }
  0x7f   :  { %620 = vmatprep.subr.bf16.mxu0 %v619_v50  ;;  %s787_s15 = scalar_lea.vmem %s528_s14, 128  ;;  %p792_p7 = scmp.lt.s32.totalorder %s528_s14, %s528_s14 }
  0x80   :  { %606 = vmatpush1.bf16.msra.mxu1 %v605_v51  ;;  %p788_p6 = scmp.ne.s32.totalorder %s528_s14, %s787_s15  ;;  %p793_p8 = scmp.lt.s32.totalorder %s787_s15, %s787_s15 }
  0x81   :  { %623 = vmatprep.subr.bf16.mxu1 %v875_v0 }
  0x82   :  { %622 = vmatpush1.bf16.msra.mxu0 %v621_v54  ;;  %p794_p9 = por %p793_p8, %p792_p7 }
  0x84   :  { %p795_p10 = pnand %p794_p9, %p788_p6 }
  0xe2   :  { %v202_v59 = vpop.permute.xlu0 %201 }
 0x148   :  { %v195_v56 = vpop.f32.mrb[0].mxu0 }
 0x149   :  { %v196_v57 = vadd.f32 %v556_v55, %v195_v56  ;;  %v576_v58 = vpop.f32.mrb[1].mxu0 }
 0x14b   :  { %v199_v60 = vmax.f32 %v196_v57, 0.0 }
 0x14d   :  { %v205_v61 = vsel %vm204_vm2, %v199_v60, %v202_v59 }
 0x14e   :  { %558 = vmatmul.mubr.msk.f32.vlgmr.msra.gmra.mrb[0].mxu1 %vm260_vm3, %v205_v61  ;;  %559 = vmatmul.mubr.msk.f32.vlgmr.msra.gmra.mrb[2].mxu0 %vm260_vm3, %v205_v61 }
 0x14f   :  { %585 = vmatprep.mubr.msk.f32.mxu1 %vm876_vm0, %v877_v1  ;;  %625 = vmatpush3.bf16.msra.mxu1 %v624_v2  ;;  %v250_v1 = vsub.s32 2, %v241_v7 }
 0x150   :  { %626 = vmatprep.subr.bf16.mxu1 %v875_v0 }
 0x151   :  { %v251_v16 = vrot.slane %v238_v9, %v250_v1 }
 0x153   :  { %628 = vmatpush3.bf16.msra.mxu1 %v627_v5 }
 0x221   :  { %v330_v13 = vpop.f32.mrb[0].mxu1  ;;  %v401_v14 = vpop.f32.mrb[2].mxu0 }
 0x222   :  { %v331_v15 = vadd.f32 %v330_v13, %v243_v11  ;;  %v332_v0 = vpop.f32.mrb[1].mxu1  ;;  %v403_v18 = vpop.f32.mrb[3].mxu0  ;;  %v402_v22 = vadd.f32 %v401_v14, %v251_v16 }
 0x223   :  { %v333_v19 = vadd.f32 %v332_v0, %v247_v12  ;;  %v404_v24 = vadd.f32 %v403_v18, %v255_v23 }
 0x224   :  { %v406_v20 = vmul.f32 0.5, %v331_v15 }
 0x225   :  { %v410_v21 = vmul.f32 0.5, %v333_v19  ;;  %v415_v25 = vmul.f32 0.5, %v404_v24 }
 0x226   :  { %645 = vtanh.f32 %v406_v20 }
 0x227   :  { %647 = vtanh.f32 %v410_v21 }
 0x228   :  { %649 = vtanh.f32 %v402_v22 }
 0x229   :  { %651 = vtanh.f32 %v415_v25 }
 0x230   :  { %v646_v26 = vpop.eup %645 }
 0x231   :  { %v648_v27 = vpop.eup %647  ;;  %v408_v28 = vmul.f32 0.5, %v646_v26 }
 0x232   :  { %v412_v29 = vmul.f32 0.5, %v648_v27  ;;  %v650_v32 = vpop.eup %649 }
 0x233   :  { %v409_v30 = vadd.f32 0.5, %v408_v28  ;;  %v652_v37 = vpop.eup %651 }
 0x234   :  { %v413_v33 = vadd.f32 0.5, %v412_v29  ;;  %v417_v38 = vmul.f32 0.5, %v652_v37 }
 0x235   :  { %v420_v34 = vmul.f32 %v650_v32, %v409_v30 }
 0x236   :  { %v419_v35 = vmul.f32 %v413_v33, %v115_v31  ;;  %v418_v39 = vadd.f32 0.5, %v417_v38 }
 0x238   :  { %v421_v36 = vadd.f32 %v420_v34, %v419_v35 }
 0x23a   :  { %653 = vtanh.f32 %v421_v36  ;;  %510 = vst.msk [vmem:[#allocation16] sm:$0xff] %vm204_vm2, %v421_v36 }
 0x244   :  { %v654_v40 = vpop.eup %653 }
 0x245   :  { %v423_v41 = vmul.f32 %v654_v40, %v418_v39 }
 0x247   :  { %509 = vst.msk [vmem:[#allocation14] sm:$0xff] %vm204_vm2, %v423_v41  ;;  %586 = vmatmul.mubr.msk.f32.vlgmr.msra.gmra.mrb[2].mxu1 %vm204_vm2, %v423_v41 }
 0x248   :  { %798 = shalt.err (!%p795_p10)
}
 0x249   :  { %s799_s16 = scalar_lea.hbm %s1097_s10, 128 }
 0x24a   :  { %p800_p11 = scmp.ne.s32.totalorder %s1097_s10, %s799_s16  ;;  %p803_p12 = scmp.lt.u32.totalorder %s799_s16, %s1097_s10 }
 0x24c   :  { %p805_p13 = pnand %p803_p12, %p800_p11 }
 0x24e   :  { %808 = shalt.err (!%p805_p13)
}
 0x24f   :  { %530 = dma.vmem_to_hbm [thread:$0]  %s528_s14, 128, %s1097_s10, [#allocation15]  }
 0x250   :  { %s879_s23 = smov [#allocation16]  }
 0x251   :  { %s537_s24 = sshll.u32 %s879_s23, 4  ;;  %s538_s24 = int_to_ptr.vmem [resolvable:$true] %s537_s24 }
 0x252   :  { %s809_s26 = scalar_lea.vmem %s538_s24, 128  ;;  %p814_p1 = scmp.lt.s32.totalorder %s538_s24, %s538_s24 }
 0x253   :  { %p810_p0 = scmp.ne.s32.totalorder %s538_s24, %s809_s26  ;;  %p815_p2 = scmp.lt.s32.totalorder %s809_s26, %s809_s26 }
 0x255   :  { %p816_p3 = por %p815_p2, %p814_p1 }
 0x257   :  { %p817_p4 = pnand %p816_p3, %p810_p0 }
 0x259   :  { %820 = shalt.err (!%p817_p4)
}
 0x25a   :  { %s821_s25 = scalar_lea.hbm %s1098_s11, 128 }
 0x25b   :  { %p822_p5 = scmp.ne.s32.totalorder %s1098_s11, %s821_s25  ;;  %p825_p6 = scmp.lt.u32.totalorder %s821_s25, %s1098_s11 }
 0x25d   :  { %p827_p7 = pnand %p825_p6, %p822_p5 }
 0x25f   :  { %830 = shalt.err (!%p827_p7)
}
 0x260   :  { %540 = dma.vmem_to_hbm [thread:$0]  %s538_s24, 128, %s1098_s11, [#allocation15]   ;;  %v560_v42 = vld [vmem:[%s1095_s8] ss:$0 sm:$0xff] }
 0x261   :  { %s880_s4 = smov [#allocation13]  }
 0x262   :  { %s517_s18 = sshll.u32 %s880_s4, 4  ;;  %s518_s18 = int_to_ptr.vmem [resolvable:$true] %s517_s18 }
 0x263   :  { %s831_s6 = scalar_lea.vmem %s518_s18, 128  ;;  %p836_p9 = scmp.lt.s32.totalorder %s518_s18, %s518_s18 }
 0x264   :  { %p832_p8 = scmp.ne.s32.totalorder %s518_s18, %s831_s6  ;;  %p837_p10 = scmp.lt.s32.totalorder %s831_s6, %s831_s6 }
 0x266   :  { %p838_p11 = por %p837_p10, %p836_p9 }
 0x268   :  { %p839_p12 = pnand %p838_p11, %p832_p8 }
 0x31a   :  { %v504_v43 = vpop.f32.mrb[2].mxu1 }
 0x31b   :  { %v505_v44 = vadd.f32 %v560_v42, %v504_v43  ;;  %v587_v45 = vpop.f32.mrb[3].mxu1 }
 0x31d   :  { %508 = vst [vmem:[#allocation13] sm:$0xff] %v505_v44 }
 0x31e   :  { %842 = shalt.err (!%p839_p12)
}
 0x31f   :  { %s843_s15 = scalar_lea.hbm %s1096_s9, 128 }
 0x320   :  { %p844_p13 = scmp.ne.s32.totalorder %s1096_s9, %s843_s15  ;;  %p847_p0 = scmp.lt.u32.totalorder %s843_s15, %s1096_s9 }
 0x322   :  { %p849_p1 = pnand %p847_p0, %p844_p13 }
 0x324   :  { %852 = shalt.err (!%p849_p1)
}
 0x325   :  { %520 = dma.vmem_to_hbm [thread:$0]  %s518_s18, 128, %s1096_s9, [#allocation4]  }
 0x326   :  { %861 = dma.done.wait [#allocation4], 128  }
 0x327   :  { %862 = vsyncadd [#allocation4], 4294967168 }
 0x328   :  { %863 = dma.done.wait [#allocation15], 256  }
 0x329   :  { %864 = vsyncadd [#allocation15], 4294967040 }
 0x32a   :  { %550 = vsyncpa [#allocation3], 1 }
 0x32b   :  { %551 = vsyncpa [#allocation6], 1 }
 0x32c   :  { %552 = vsyncpa [#allocation9], 1 }
 0x32d   :  { %553 = vsyncpa [#allocation12], 1 }
 0x32e   :  { %554 = vsyncpa [#allocation4], 1 }
 0x32f   :  { %555 = vsyncpa [#allocation15], 1 }

</bundles_post_ra>
